<compile_context>
chip_gen: v5e
topology: v5e:2x2
jax: 0.10.0
libtpu: 0.0.40
codegen_flags: <defaults>
</compile_context>

<pallas_src>
import jax
import jax.numpy as jnp
from jax import lax
from jax.experimental import pallas as pl
from jax.experimental.pallas import tpu as pltpu

EPS = 1e-5

INPUT_DIM = 64     # stands in for 1280 (node feature / sup embedding dim)
HIDDEN = 32        # stands in for gcn_hidden=256
N_NODES = 16       # nodes per graph-batch
N_GRAPHS = 2       # graphs per graph-batch (rows of the pair batch)
N_EDGES = 24
PAD_OUT = 128      # lane-dense head output width (logit in column 0)

# rows of the packed bias slab
_B_C, _B_G1, _B_G2, _B_SUP, _B_1, _B_2, _B_3 = range(7)


# ------------------------------ Pallas kernel -------------------------------

def pairnet_kernel(x_ref, adj_ref, pool_ref, sup_ref,
                   wc_ref, g2w_ref, supw_ref, w1_ref, w2_ref, w3_ref,
                   bias_ref, o_ref):
    """Fully fused PairNet forward (eval mode), one grid step.

    Per graph b in {0, 1}:
        hw = X_b @ Wc + bc                      (input_linear folded into gcn1)
        h  = relu(Â_b @ hw + bg1)
        h  = relu(Â_b @ (h @ Wg2) + bg2)
        z_b = P_b @ h                           (global_mean_pool as a matmul)
    Head:
        s  = sup @ Wsup + bsup                  (both sides in one dot)
        f  = [z1 | s1 | z2 | s2]                (lane concat, no HBM concat)
        out = ((relu(f @ W1 + b1)) -> relu(.@W2 + b2)) @ W3p + b3p
    All matmul inputs bf16, f32 accumulation; BN folded into W1/b1, W2/b2.
    """
    H = HIDDEN
    G = N_GRAPHS

    # packed biases (f32), static slices of the single (8, 128) slab
    bc    = bias_ref[_B_C:_B_C + 1, :H]
    g1_b  = bias_ref[_B_G1:_B_G1 + 1, :H]
    g2_b  = bias_ref[_B_G2:_B_G2 + 1, :H]
    sup_b = bias_ref[_B_SUP:_B_SUP + 1, :H]
    b1    = bias_ref[_B_1:_B_1 + 1, :H]
    b2    = bias_ref[_B_2:_B_2 + 1, :H // 2]
    b3    = bias_ref[_B_3:_B_3 + 1, :]

    # ---- GCN encoder, both graphs (static unroll; Â loaded once per graph) --
    zs = []
    for b in range(2):
        adj = adj_ref[b]                                         # (N, N) bf16
        hw = jnp.dot(x_ref[b], wc_ref[...],
                     preferred_element_type=jnp.float32) + bc    # folded lin+gcn1
        h = jnp.maximum(
            jnp.dot(adj, hw.astype(jnp.bfloat16),
                    preferred_element_type=jnp.float32) + g1_b, 0.0)
        hw = jnp.dot(h.astype(jnp.bfloat16), g2w_ref[...],
                     preferred_element_type=jnp.float32)
        h = jnp.maximum(
            jnp.dot(adj, hw.astype(jnp.bfloat16),
                    preferred_element_type=jnp.float32) + g2_b, 0.0)
        zs.append(jnp.dot(pool_ref[b], h.astype(jnp.bfloat16),
                          preferred_element_type=jnp.float32))   # (G, H) f32
    z1, z2 = zs

    # ---- sup_linear for both sides in ONE dot (sup pre-stacked to (2G, D)) --
    s = jnp.dot(sup_ref[...], supw_ref[...],
                preferred_element_type=jnp.float32) + sup_b      # (2G, H) f32
    s1, s2 = s[:G], s[G:]

    # ---- MLP head: concat in registers, single (G,4H)@(4H,H) dot -----------
    feat = jnp.concatenate([z1, s1, z2, s2], axis=-1).astype(jnp.bfloat16)
    h = jnp.maximum(jnp.dot(feat, w1_ref[...],
                            preferred_element_type=jnp.float32) + b1, 0.0)
    h = jnp.maximum(jnp.dot(h.astype(jnp.bfloat16), w2_ref[...],
                            preferred_element_type=jnp.float32) + b2, 0.0)
    # final projection into a lane-dense padded slab (logit in column 0)
    o_ref[...] = jnp.dot(h.astype(jnp.bfloat16), w3_ref[...],
                         preferred_element_type=jnp.float32) + b3


# --------------------------- pallas_call wrapper -----------------------------

def _full_spec(shape):
    """Whole array as one block (single grid step)."""
    nd = len(shape)
    return pl.BlockSpec(shape, lambda i, _nd=nd: (0,) * _nd)


def pairnet_forward(q, x, adj, pool, sup):
    """One fused pallas_call for the whole PairNet forward; returns logits (G,)."""
    args = (x, adj, pool, sup,
            q["wc"], q["g2_w"], q["sup_w"], q["w1"], q["w2"], q["w3p"],
            q["bias"])
    out = pl.pallas_call(
        pairnet_kernel,
        out_shape=jax.ShapeDtypeStruct((N_GRAPHS, PAD_OUT), jnp.float32),
        grid=(1,),
        in_specs=[_full_spec(a.shape) for a in args],
        out_specs=_full_spec((N_GRAPHS, PAD_OUT)),
        compiler_params=pltpu.CompilerParams(
            dimension_semantics=("arbitrary",)),
    )(*args)
    return out[:, 0]                                 # matches .squeeze(-1)


# ----------------------------- plain-JAX glue --------------------------------

def gcn_norm_adj(edge_index, edge_weight, num_nodes):
    """Dense Â = D^{-1/2}(A + I)D^{-1/2}, Â[dst, src] entries (source_to_target)."""
    src, dst = edge_index[0], edge_index[1]
    loop = jnp.arange(num_nodes, dtype=edge_index.dtype)
    src = jnp.concatenate([src, loop])
    dst = jnp.concatenate([dst, loop])
    w = jnp.concatenate([edge_weight, jnp.ones((num_nodes,), jnp.float32)])
    deg = jnp.zeros((num_nodes,), jnp.float32).at[dst].add(w)
    dinv = jnp.where(deg > 0, 1.0 / jnp.sqrt(deg), 0.0)
    norm = dinv[src] * w * dinv[dst]
    adj = jnp.zeros((num_nodes, num_nodes), jnp.float32).at[dst, src].add(norm)
    return adj


def mean_pool_matrix(batch, num_graphs):
    onehot = (batch[None, :] == jnp.arange(num_graphs)[:, None]).astype(jnp.float32)
    counts = jnp.maximum(onehot.sum(axis=1, keepdims=True), 1.0)
    return onehot / counts


def init_linear(key, fan_in, fan_out):
    k1, k2 = jax.random.split(key)
    bound = 1.0 / float(fan_in) ** 0.5
    w = jax.random.uniform(k1, (fan_in, fan_out), jnp.float32, -bound, bound)
    b = jax.random.uniform(k2, (1, fan_out), jnp.float32, -bound, bound)
    return w, b


def init_params(key):
    keys = jax.random.split(key, 8)
    p = {}
    p["in_w"], p["in_b"] = init_linear(keys[0], INPUT_DIM, HIDDEN)       # input_linear
    p["g1_w"], p["g1_b"] = init_linear(keys[1], HIDDEN, HIDDEN)          # gcn1
    p["g2_w"], p["g2_b"] = init_linear(keys[2], HIDDEN, HIDDEN)          # gcn2
    p["sup_w"], p["sup_b"] = init_linear(keys[3], INPUT_DIM, HIDDEN)     # sup_linear
    p["w1"], p["b1"] = init_linear(keys[4], 4 * HIDDEN, HIDDEN)          # net[0]
    p["w2"], p["b2"] = init_linear(keys[5], HIDDEN, HIDDEN // 2)         # net[4]
    p["w3"], p["b3"] = init_linear(keys[6], HIDDEN // 2, 1)              # net[8]
    # BatchNorm1d defaults: gamma=1, beta=0, running mean/var = 0/1
    p["bn1_g"] = jnp.ones((1, HIDDEN), jnp.float32)
    p["bn1_b"] = jnp.zeros((1, HIDDEN), jnp.float32)
    p["bn1_m"] = jnp.zeros((1, HIDDEN), jnp.float32)
    p["bn1_v"] = jnp.ones((1, HIDDEN), jnp.float32)
    p["bn2_g"] = jnp.ones((1, HIDDEN // 2), jnp.float32)
    p["bn2_b"] = jnp.zeros((1, HIDDEN // 2), jnp.float32)
    p["bn2_m"] = jnp.zeros((1, HIDDEN // 2), jnp.float32)
    p["bn2_v"] = jnp.ones((1, HIDDEN // 2), jnp.float32)
    return p


def prepare_inference_params(p):
    """One-time host prep (EVAL MODE ONLY — BN uses running stats, Dropout=id):
      * fold input_linear into gcn1: Wc = Wi @ Wg1, bc = bi @ Wg1 (exact, f32);
      * fold eval-mode BN1/BN2 into the preceding Linears (exact);
      * keep W1 as a single (4H, H) operand; pad the final 1-wide projection to
        a lane-dense 128-wide slab;
      * pack all biases into ONE (8, 128) f32 slab (one DMA instead of six);
      * cast matmul weights to bf16 (biases stay f32)."""
    H = HIDDEN
    bf16 = lambda a: a.astype(jnp.bfloat16)
    # BN folds (exact for eval-mode running stats)
    sc1 = p["bn1_g"] * lax.rsqrt(p["bn1_v"] + EPS)
    w1f = p["w1"] * sc1
    b1f = (p["b1"] - p["bn1_m"]) * sc1 + p["bn1_b"]
    sc2 = p["bn2_g"] * lax.rsqrt(p["bn2_v"] + EPS)
    w2f = p["w2"] * sc2
    b2f = (p["b2"] - p["bn2_m"]) * sc2 + p["bn2_b"]
    # input_linear folded into gcn1 (exact algebra, f32)
    wc = p["in_w"] @ p["g1_w"]
    bc = p["in_b"] @ p["g1_w"]
    # lane-dense final projection
    w3p = jnp.zeros((H // 2, PAD_OUT), jnp.float32).at[:, :1].set(p["w3"])
    b3p = jnp.zeros((1, PAD_OUT), jnp.float32).at[:, :1].set(p["b3"])
    # packed bias slab
    bias = jnp.zeros((8, PAD_OUT), jnp.float32)
    bias = bias.at[_B_C, :H].set(bc[0])
    bias = bias.at[_B_G1, :H].set(p["g1_b"][0])
    bias = bias.at[_B_G2, :H].set(p["g2_b"][0])
    bias = bias.at[_B_SUP, :H].set(p["sup_b"][0])
    bias = bias.at[_B_1, :H].set(b1f[0])
    bias = bias.at[_B_2, :H // 2].set(b2f[0])
    bias = bias.at[_B_3, :].set(b3p[0])
    return {
        "wc": bf16(wc), "g2_w": bf16(p["g2_w"]), "sup_w": bf16(p["sup_w"]),
        "w1": bf16(w1f), "w2": bf16(w2f), "w3p": bf16(w3p),
        "bias": bias,
    }


def prepare_pair_inputs(g1, g2, sup1, sup2):
    """One-time host prep of the pair's inputs: stack + cast to bf16 so the
    jitted forward contains only the fused pallas_call (no per-call stack/cast
    ops)."""
    x = jnp.stack([g1[0], g2[0]]).astype(jnp.bfloat16)       # (2, N, D)
    adj = jnp.stack([g1[1], g2[1]]).astype(jnp.bfloat16)     # (2, N, N)
    pool = jnp.stack([g1[2], g2[2]]).astype(jnp.bfloat16)    # (2, G, N)
    sup = jnp.concatenate([sup1, sup2], axis=0).astype(jnp.bfloat16)  # (2G, D)
    return x, adj, pool, sup


# ----------------------------------- main -------------------------------------

def make_graph(key):
    kx, ke, kw = jax.random.split(key, 3)
    x = jax.random.normal(kx, (N_NODES, INPUT_DIM), jnp.float32)
    edge_index = jax.random.randint(ke, (2, N_EDGES), 0, N_NODES, jnp.int32)
    edge_weight = jax.random.uniform(kw, (N_EDGES,), jnp.float32, 0.1, 1.0)
    # first half of nodes -> graph 0, second half -> graph 1
    batch = jnp.repeat(jnp.arange(N_GRAPHS, dtype=jnp.int32), N_NODES // N_GRAPHS)
    adj = gcn_norm_adj(edge_index, edge_weight, N_NODES)
    pool = mean_pool_matrix(batch, N_GRAPHS)
    return (x, adj, pool)


if __name__ == "__main__":
    key = jax.random.PRNGKey(0)
    k_param, k_g1, k_g2, k_s1, k_s2 = jax.random.split(key, 5)

    params = prepare_inference_params(init_params(k_param))
    g1 = make_graph(k_g1)
    g2 = make_graph(k_g2)
    sup1 = jax.random.normal(k_s1, (N_GRAPHS, INPUT_DIM), jnp.float32)
    sup2 = jax.random.normal(k_s2, (N_GRAPHS, INPUT_DIM), jnp.float32)
    x, adj, pool, sup = prepare_pair_inputs(g1, g2, sup1, sup2)

    out = jax.jit(pairnet_forward)(params, x, adj, pool, sup)
    out = jax.block_until_ready(out)
    assert out.shape == (N_GRAPHS,)
    print("KERNEL_OK")
</pallas_src>

<mosaic_0001>
module attributes {stable_mosaic.version = 11 : i64} {
  func.func @pairnet_kernel(%arg0: i32, %arg1: memref<2x16x64xbf16, #tpu.memory_space<vmem>>, %arg2: memref<2x16x16xbf16, #tpu.memory_space<vmem>>, %arg3: memref<2x2x16xbf16, #tpu.memory_space<vmem>>, %arg4: memref<4x64xbf16, #tpu.memory_space<vmem>>, %arg5: memref<64x32xbf16, #tpu.memory_space<vmem>>, %arg6: memref<32x32xbf16, #tpu.memory_space<vmem>>, %arg7: memref<64x32xbf16, #tpu.memory_space<vmem>>, %arg8: memref<128x32xbf16, #tpu.memory_space<vmem>>, %arg9: memref<32x16xbf16, #tpu.memory_space<vmem>>, %arg10: memref<16x128xbf16, #tpu.memory_space<vmem>>, %arg11: memref<8x128xf32, #tpu.memory_space<vmem>>, %arg12: memref<2x128xf32, #tpu.memory_space<vmem>>) attributes {dimension_semantics = [#tpu.dimension_semantics<arbitrary>], iteration_bounds = array<i64: 1>, scalar_prefetch = 0 : i64, scratch_operands = 0 : i64, tpu.core_type = #tpu.core_type<tc>, window_params = [{pipeline_mode = #tpu.pipeline_mode<synchronous>, transform_indices = @transform_0, window_bounds = array<i64: 2, 16, 64>}, {pipeline_mode = #tpu.pipeline_mode<synchronous>, transform_indices = @transform_1, window_bounds = array<i64: 2, 16, 16>}, {pipeline_mode = #tpu.pipeline_mode<synchronous>, transform_indices = @transform_2, window_bounds = array<i64: 2, 2, 16>}, {pipeline_mode = #tpu.pipeline_mode<synchronous>, transform_indices = @transform_3, window_bounds = array<i64: 4, 64>}, {pipeline_mode = #tpu.pipeline_mode<synchronous>, transform_indices = @transform_4, window_bounds = array<i64: 64, 32>}, {pipeline_mode = #tpu.pipeline_mode<synchronous>, transform_indices = @transform_5, window_bounds = array<i64: 32, 32>}, {pipeline_mode = #tpu.pipeline_mode<synchronous>, transform_indices = @transform_6, window_bounds = array<i64: 64, 32>}, {pipeline_mode = #tpu.pipeline_mode<synchronous>, transform_indices = @transform_7, window_bounds = array<i64: 128, 32>}, {pipeline_mode = #tpu.pipeline_mode<synchronous>, transform_indices = @transform_8, window_bounds = array<i64: 32, 16>}, {pipeline_mode = #tpu.pipeline_mode<synchronous>, transform_indices = @transform_9, window_bounds = array<i64: 16, 128>}, {pipeline_mode = #tpu.pipeline_mode<synchronous>, transform_indices = @transform_10, window_bounds = array<i64: 8, 128>}, {pipeline_mode = #tpu.pipeline_mode<synchronous>, transform_indices = @transform_11, window_bounds = array<i64: 2, 128>}]} {
    %c0 = arith.constant 0 : index
    %c0_0 = arith.constant 0 : index
    %0 = vector.load %arg11[%c0, %c0_0] : memref<8x128xf32, #tpu.memory_space<vmem>>, vector<1x32xf32>
    %c1 = arith.constant 1 : index
    %c0_1 = arith.constant 0 : index
    %1 = vector.load %arg11[%c1, %c0_1] : memref<8x128xf32, #tpu.memory_space<vmem>>, vector<1x32xf32>
    %c2 = arith.constant 2 : index
    %c0_2 = arith.constant 0 : index
    %2 = vector.load %arg11[%c2, %c0_2] : memref<8x128xf32, #tpu.memory_space<vmem>>, vector<1x32xf32>
    %c3 = arith.constant 3 : index
    %c0_3 = arith.constant 0 : index
    %3 = vector.load %arg11[%c3, %c0_3] : memref<8x128xf32, #tpu.memory_space<vmem>>, vector<1x32xf32>
    %c4 = arith.constant 4 : index
    %c0_4 = arith.constant 0 : index
    %4 = vector.load %arg11[%c4, %c0_4] : memref<8x128xf32, #tpu.memory_space<vmem>>, vector<1x32xf32>
    %c5 = arith.constant 5 : index
    %c0_5 = arith.constant 0 : index
    %5 = vector.load %arg11[%c5, %c0_5] : memref<8x128xf32, #tpu.memory_space<vmem>>, vector<1x16xf32>
    %c6 = arith.constant 6 : index
    %c0_6 = arith.constant 0 : index
    %6 = vector.load %arg11[%c6, %c0_6] : memref<8x128xf32, #tpu.memory_space<vmem>>, vector<1x128xf32>
    %c0_7 = arith.constant 0 : index
    %c0_8 = arith.constant 0 : index
    %c0_9 = arith.constant 0 : index
    %7 = vector.load %arg2[%c0_7, %c0_8, %c0_9] : memref<2x16x16xbf16, #tpu.memory_space<vmem>>, vector<1x16x16xbf16>
    %8 = vector.shape_cast %7 : vector<1x16x16xbf16> to vector<16x16xbf16>
    %c0_10 = arith.constant 0 : index
    %c0_11 = arith.constant 0 : index
    %c0_12 = arith.constant 0 : index
    %9 = vector.load %arg1[%c0_10, %c0_11, %c0_12] : memref<2x16x64xbf16, #tpu.memory_space<vmem>>, vector<1x16x64xbf16>
    %10 = vector.shape_cast %9 : vector<1x16x64xbf16> to vector<16x64xbf16>
    %c0_13 = arith.constant 0 : index
    %c0_14 = arith.constant 0 : index
    %11 = vector.load %arg5[%c0_13, %c0_14] : memref<64x32xbf16, #tpu.memory_space<vmem>>, vector<64x32xbf16>
    %cst = arith.constant dense<0.000000e+00> : vector<16x32xf32>
    %12 = tpu.matmul %10, %11, %cst {dimension_numbers = #tpu.dot_dimension_numbers<[1], [0], [0], [1], [0, 0, 1, 1], [], []>} : vector<16x64xbf16>, vector<64x32xbf16>, vector<16x32xf32> -> vector<16x32xf32>
    %13 = vector.broadcast %0 : vector<1x32xf32> to vector<16x32xf32>
    %14 = arith.addf %12, %13 : vector<16x32xf32>
    %15 = arith.truncf %14 : vector<16x32xf32> to vector<16x32xbf16>
    %cst_15 = arith.constant dense<0.000000e+00> : vector<16x32xf32>
    %16 = tpu.matmul %8, %15, %cst_15 {dimension_numbers = #tpu.dot_dimension_numbers<[1], [0], [0], [1], [0, 0, 1, 1], [], []>} : vector<16x16xbf16>, vector<16x32xbf16>, vector<16x32xf32> -> vector<16x32xf32>
    %17 = vector.broadcast %1 : vector<1x32xf32> to vector<16x32xf32>
    %18 = arith.addf %16, %17 : vector<16x32xf32>
    %cst_16 = arith.constant 0.000000e+00 : f32
    %19 = vector.broadcast %cst_16 : f32 to vector<16x32xf32>
    %20 = arith.maximumf %18, %19 : vector<16x32xf32>
    %21 = arith.truncf %20 : vector<16x32xf32> to vector<16x32xbf16>
    %c0_17 = arith.constant 0 : index
    %c0_18 = arith.constant 0 : index
    %22 = vector.load %arg6[%c0_17, %c0_18] : memref<32x32xbf16, #tpu.memory_space<vmem>>, vector<32x32xbf16>
    %cst_19 = arith.constant dense<0.000000e+00> : vector<16x32xf32>
    %23 = tpu.matmul %21, %22, %cst_19 {dimension_numbers = #tpu.dot_dimension_numbers<[1], [0], [0], [1], [0, 0, 1, 1], [], []>} : vector<16x32xbf16>, vector<32x32xbf16>, vector<16x32xf32> -> vector<16x32xf32>
    %24 = arith.truncf %23 : vector<16x32xf32> to vector<16x32xbf16>
    %cst_20 = arith.constant dense<0.000000e+00> : vector<16x32xf32>
    %25 = tpu.matmul %8, %24, %cst_20 {dimension_numbers = #tpu.dot_dimension_numbers<[1], [0], [0], [1], [0, 0, 1, 1], [], []>} : vector<16x16xbf16>, vector<16x32xbf16>, vector<16x32xf32> -> vector<16x32xf32>
    %26 = vector.broadcast %2 : vector<1x32xf32> to vector<16x32xf32>
    %27 = arith.addf %25, %26 : vector<16x32xf32>
    %cst_21 = arith.constant 0.000000e+00 : f32
    %28 = vector.broadcast %cst_21 : f32 to vector<16x32xf32>
    %29 = arith.maximumf %27, %28 : vector<16x32xf32>
    %c0_22 = arith.constant 0 : index
    %c0_23 = arith.constant 0 : index
    %c0_24 = arith.constant 0 : index
    %30 = vector.load %arg3[%c0_22, %c0_23, %c0_24] : memref<2x2x16xbf16, #tpu.memory_space<vmem>>, vector<1x2x16xbf16>
    %31 = vector.shape_cast %30 : vector<1x2x16xbf16> to vector<2x16xbf16>
    %32 = arith.truncf %29 : vector<16x32xf32> to vector<16x32xbf16>
    %cst_25 = arith.constant dense<0.000000e+00> : vector<2x32xf32>
    %33 = tpu.matmul %31, %32, %cst_25 {dimension_numbers = #tpu.dot_dimension_numbers<[1], [0], [0], [1], [0, 0, 1, 1], [], []>} : vector<2x16xbf16>, vector<16x32xbf16>, vector<2x32xf32> -> vector<2x32xf32>
    %c1_26 = arith.constant 1 : index
    %c0_27 = arith.constant 0 : index
    %c0_28 = arith.constant 0 : index
    %34 = vector.load %arg2[%c1_26, %c0_27, %c0_28] : memref<2x16x16xbf16, #tpu.memory_space<vmem>>, vector<1x16x16xbf16>
    %35 = vector.shape_cast %34 : vector<1x16x16xbf16> to vector<16x16xbf16>
    %c1_29 = arith.constant 1 : index
    %c0_30 = arith.constant 0 : index
    %c0_31 = arith.constant 0 : index
    %36 = vector.load %arg1[%c1_29, %c0_30, %c0_31] : memref<2x16x64xbf16, #tpu.memory_space<vmem>>, vector<1x16x64xbf16>
    %37 = vector.shape_cast %36 : vector<1x16x64xbf16> to vector<16x64xbf16>
    %c0_32 = arith.constant 0 : index
    %c0_33 = arith.constant 0 : index
    %38 = vector.load %arg5[%c0_32, %c0_33] : memref<64x32xbf16, #tpu.memory_space<vmem>>, vector<64x32xbf16>
    %cst_34 = arith.constant dense<0.000000e+00> : vector<16x32xf32>
    %39 = tpu.matmul %37, %38, %cst_34 {dimension_numbers = #tpu.dot_dimension_numbers<[1], [0], [0], [1], [0, 0, 1, 1], [], []>} : vector<16x64xbf16>, vector<64x32xbf16>, vector<16x32xf32> -> vector<16x32xf32>
    %40 = vector.broadcast %0 : vector<1x32xf32> to vector<16x32xf32>
    %41 = arith.addf %39, %40 : vector<16x32xf32>
    %42 = arith.truncf %41 : vector<16x32xf32> to vector<16x32xbf16>
    %cst_35 = arith.constant dense<0.000000e+00> : vector<16x32xf32>
    %43 = tpu.matmul %35, %42, %cst_35 {dimension_numbers = #tpu.dot_dimension_numbers<[1], [0], [0], [1], [0, 0, 1, 1], [], []>} : vector<16x16xbf16>, vector<16x32xbf16>, vector<16x32xf32> -> vector<16x32xf32>
    %44 = vector.broadcast %1 : vector<1x32xf32> to vector<16x32xf32>
    %45 = arith.addf %43, %44 : vector<16x32xf32>
    %cst_36 = arith.constant 0.000000e+00 : f32
    %46 = vector.broadcast %cst_36 : f32 to vector<16x32xf32>
    %47 = arith.maximumf %45, %46 : vector<16x32xf32>
    %48 = arith.truncf %47 : vector<16x32xf32> to vector<16x32xbf16>
    %c0_37 = arith.constant 0 : index
    %c0_38 = arith.constant 0 : index
    %49 = vector.load %arg6[%c0_37, %c0_38] : memref<32x32xbf16, #tpu.memory_space<vmem>>, vector<32x32xbf16>
    %cst_39 = arith.constant dense<0.000000e+00> : vector<16x32xf32>
    %50 = tpu.matmul %48, %49, %cst_39 {dimension_numbers = #tpu.dot_dimension_numbers<[1], [0], [0], [1], [0, 0, 1, 1], [], []>} : vector<16x32xbf16>, vector<32x32xbf16>, vector<16x32xf32> -> vector<16x32xf32>
    %51 = arith.truncf %50 : vector<16x32xf32> to vector<16x32xbf16>
    %cst_40 = arith.constant dense<0.000000e+00> : vector<16x32xf32>
    %52 = tpu.matmul %35, %51, %cst_40 {dimension_numbers = #tpu.dot_dimension_numbers<[1], [0], [0], [1], [0, 0, 1, 1], [], []>} : vector<16x16xbf16>, vector<16x32xbf16>, vector<16x32xf32> -> vector<16x32xf32>
    %53 = vector.broadcast %2 : vector<1x32xf32> to vector<16x32xf32>
    %54 = arith.addf %52, %53 : vector<16x32xf32>
    %cst_41 = arith.constant 0.000000e+00 : f32
    %55 = vector.broadcast %cst_41 : f32 to vector<16x32xf32>
    %56 = arith.maximumf %54, %55 : vector<16x32xf32>
    %c1_42 = arith.constant 1 : index
    %c0_43 = arith.constant 0 : index
    %c0_44 = arith.constant 0 : index
    %57 = vector.load %arg3[%c1_42, %c0_43, %c0_44] : memref<2x2x16xbf16, #tpu.memory_space<vmem>>, vector<1x2x16xbf16>
    %58 = vector.shape_cast %57 : vector<1x2x16xbf16> to vector<2x16xbf16>
    %59 = arith.truncf %56 : vector<16x32xf32> to vector<16x32xbf16>
    %cst_45 = arith.constant dense<0.000000e+00> : vector<2x32xf32>
    %60 = tpu.matmul %58, %59, %cst_45 {dimension_numbers = #tpu.dot_dimension_numbers<[1], [0], [0], [1], [0, 0, 1, 1], [], []>} : vector<2x16xbf16>, vector<16x32xbf16>, vector<2x32xf32> -> vector<2x32xf32>
    %c0_46 = arith.constant 0 : index
    %c0_47 = arith.constant 0 : index
    %61 = vector.load %arg4[%c0_46, %c0_47] : memref<4x64xbf16, #tpu.memory_space<vmem>>, vector<4x64xbf16>
    %c0_48 = arith.constant 0 : index
    %c0_49 = arith.constant 0 : index
    %62 = vector.load %arg7[%c0_48, %c0_49] : memref<64x32xbf16, #tpu.memory_space<vmem>>, vector<64x32xbf16>
    %cst_50 = arith.constant dense<0.000000e+00> : vector<4x32xf32>
    %63 = tpu.matmul %61, %62, %cst_50 {dimension_numbers = #tpu.dot_dimension_numbers<[1], [0], [0], [1], [0, 0, 1, 1], [], []>} : vector<4x64xbf16>, vector<64x32xbf16>, vector<4x32xf32> -> vector<4x32xf32>
    %64 = vector.broadcast %3 : vector<1x32xf32> to vector<4x32xf32>
    %65 = arith.addf %63, %64 : vector<4x32xf32>
    %66 = vector.extract_strided_slice %65 {offsets = [0, 0], sizes = [2, 32], strides = [1, 1]} : vector<4x32xf32> to vector<2x32xf32>
    %67 = vector.extract_strided_slice %65 {offsets = [2, 0], sizes = [2, 32], strides = [1, 1]} : vector<4x32xf32> to vector<2x32xf32>
    %68 = tpu.concatenate %33, %66, %60, %67 in 1 : vector<2x32xf32>, vector<2x32xf32>, vector<2x32xf32>, vector<2x32xf32> -> vector<2x128xf32>
    %69 = arith.truncf %68 : vector<2x128xf32> to vector<2x128xbf16>
    %c0_51 = arith.constant 0 : index
    %c0_52 = arith.constant 0 : index
    %70 = vector.load %arg8[%c0_51, %c0_52] : memref<128x32xbf16, #tpu.memory_space<vmem>>, vector<128x32xbf16>
    %cst_53 = arith.constant dense<0.000000e+00> : vector<2x32xf32>
    %71 = tpu.matmul %69, %70, %cst_53 {dimension_numbers = #tpu.dot_dimension_numbers<[1], [0], [0], [1], [0, 0, 1, 1], [], []>} : vector<2x128xbf16>, vector<128x32xbf16>, vector<2x32xf32> -> vector<2x32xf32>
    %72 = vector.broadcast %4 : vector<1x32xf32> to vector<2x32xf32>
    %73 = arith.addf %71, %72 : vector<2x32xf32>
    %cst_54 = arith.constant 0.000000e+00 : f32
    %74 = vector.broadcast %cst_54 : f32 to vector<2x32xf32>
    %75 = arith.maximumf %73, %74 : vector<2x32xf32>
    %76 = arith.truncf %75 : vector<2x32xf32> to vector<2x32xbf16>
    %c0_55 = arith.constant 0 : index
    %c0_56 = arith.constant 0 : index
    %77 = vector.load %arg9[%c0_55, %c0_56] : memref<32x16xbf16, #tpu.memory_space<vmem>>, vector<32x16xbf16>
    %cst_57 = arith.constant dense<0.000000e+00> : vector<2x16xf32>
    %78 = tpu.matmul %76, %77, %cst_57 {dimension_numbers = #tpu.dot_dimension_numbers<[1], [0], [0], [1], [0, 0, 1, 1], [], []>} : vector<2x32xbf16>, vector<32x16xbf16>, vector<2x16xf32> -> vector<2x16xf32>
    %79 = vector.broadcast %5 : vector<1x16xf32> to vector<2x16xf32>
    %80 = arith.addf %78, %79 : vector<2x16xf32>
    %cst_58 = arith.constant 0.000000e+00 : f32
    %81 = vector.broadcast %cst_58 : f32 to vector<2x16xf32>
    %82 = arith.maximumf %80, %81 : vector<2x16xf32>
    %83 = arith.truncf %82 : vector<2x16xf32> to vector<2x16xbf16>
    %c0_59 = arith.constant 0 : index
    %c0_60 = arith.constant 0 : index
    %84 = vector.load %arg10[%c0_59, %c0_60] : memref<16x128xbf16, #tpu.memory_space<vmem>>, vector<16x128xbf16>
    %cst_61 = arith.constant dense<0.000000e+00> : vector<2x128xf32>
    %85 = tpu.matmul %83, %84, %cst_61 {dimension_numbers = #tpu.dot_dimension_numbers<[1], [0], [0], [1], [0, 0, 1, 1], [], []>} : vector<2x16xbf16>, vector<16x128xbf16>, vector<2x128xf32> -> vector<2x128xf32>
    %86 = vector.broadcast %6 : vector<1x128xf32> to vector<2x128xf32>
    %87 = arith.addf %85, %86 : vector<2x128xf32>
    %c0_62 = arith.constant 0 : index
    %c0_63 = arith.constant 0 : index
    %88 = vector.load %arg12[%c0_62, %c0_63] : memref<2x128xf32, #tpu.memory_space<vmem>>, vector<2x128xf32>
    tpu.vector_store %arg12[%c0_62, %c0_63], %87 {strides = array<i32>} : memref<2x128xf32, #tpu.memory_space<vmem>>, vector<2x128xf32>,
    return
  }
  func.func @transform_0(%arg0: i32) -> (i32, i32, i32) {
    %c0_i32 = arith.constant 0 : i32
    %c0_i32_0 = arith.constant 0 : i32
    %c0_i32_1 = arith.constant 0 : i32
    %c0_i32_2 = arith.constant 0 : i32
    return %c0_i32, %c0_i32_0, %c0_i32_1 : i32, i32, i32
  }
  func.func @transform_1(%arg0: i32) -> (i32, i32, i32) {
    %c0_i32 = arith.constant 0 : i32
    %c0_i32_0 = arith.constant 0 : i32
    %c0_i32_1 = arith.constant 0 : i32
    %c0_i32_2 = arith.constant 0 : i32
    return %c0_i32, %c0_i32_0, %c0_i32_1 : i32, i32, i32
  }
  func.func @transform_2(%arg0: i32) -> (i32, i32, i32) {
    %c0_i32 = arith.constant 0 : i32
    %c0_i32_0 = arith.constant 0 : i32
    %c0_i32_1 = arith.constant 0 : i32
    %c0_i32_2 = arith.constant 0 : i32
    return %c0_i32, %c0_i32_0, %c0_i32_1 : i32, i32, i32
  }
  func.func @transform_3(%arg0: i32) -> (i32, i32) {
    %c0_i32 = arith.constant 0 : i32
    %c0_i32_0 = arith.constant 0 : i32
    %c0_i32_1 = arith.constant 0 : i32
    return %c0_i32, %c0_i32_0 : i32, i32
  }
  func.func @transform_4(%arg0: i32) -> (i32, i32) {
    %c0_i32 = arith.constant 0 : i32
    %c0_i32_0 = arith.constant 0 : i32
    %c0_i32_1 = arith.constant 0 : i32
    return %c0_i32, %c0_i32_0 : i32, i32
  }
  func.func @transform_5(%arg0: i32) -> (i32, i32) {
    %c0_i32 = arith.constant 0 : i32
    %c0_i32_0 = arith.constant 0 : i32
    %c0_i32_1 = arith.constant 0 : i32
    return %c0_i32, %c0_i32_0 : i32, i32
  }
  func.func @transform_6(%arg0: i32) -> (i32, i32) {
    %c0_i32 = arith.constant 0 : i32
    %c0_i32_0 = arith.constant 0 : i32
    %c0_i32_1 = arith.constant 0 : i32
    return %c0_i32, %c0_i32_0 : i32, i32
  }
  func.func @transform_7(%arg0: i32) -> (i32, i32) {
    %c0_i32 = arith.constant 0 : i32
    %c0_i32_0 = arith.constant 0 : i32
    %c0_i32_1 = arith.constant 0 : i32
    return %c0_i32, %c0_i32_0 : i32, i32
  }
  func.func @transform_8(%arg0: i32) -> (i32, i32) {
    %c0_i32 = arith.constant 0 : i32
    %c0_i32_0 = arith.constant 0 : i32
    %c0_i32_1 = arith.constant 0 : i32
    return %c0_i32, %c0_i32_0 : i32, i32
  }
  func.func @transform_9(%arg0: i32) -> (i32, i32) {
    %c0_i32 = arith.constant 0 : i32
    %c0_i32_0 = arith.constant 0 : i32
    %c0_i32_1 = arith.constant 0 : i32
    return %c0_i32, %c0_i32_0 : i32, i32
  }
  func.func @transform_10(%arg0: i32) -> (i32, i32) {
    %c0_i32 = arith.constant 0 : i32
    %c0_i32_0 = arith.constant 0 : i32
    %c0_i32_1 = arith.constant 0 : i32
    return %c0_i32, %c0_i32_0 : i32, i32
  }
  func.func @transform_11(%arg0: i32) -> (i32, i32) {
    %c0_i32 = arith.constant 0 : i32
    %c0_i32_0 = arith.constant 0 : i32
    %c0_i32_1 = arith.constant 0 : i32
    return %c0_i32, %c0_i32_0 : i32, i32
  }
}

</mosaic_0001>

<bundles_post_ra>
// kernel: pairnet_forward.1
= control target key start
LH: loop header
LB: loop body
LE: loop exit
PB: predicated region body
PF: predicated region fallthrough
CT: control target
= control target key end

     0   :  { %vm88_vm0 = vcmask 523264   ;;  %vm113_vm1 = vcmask 130048   ;;  %vm150_vm2 = vcmask 261120   ;;  %s676_s13 = smov 32   ;;  %s677_s15 = smov 96   ;;  %vm375_vm3 = vcmask 785408   ;;  %s862_s4 = inlined_call_operand.vmem [shape: bf16[64,32], index: 4, kind: input, shape index: {}]   ;;  %s863_s10 = inlined_call_operand.vmem [shape: f32[8,128], index: 10, kind: input, shape index: {}]   ;;  %s864_s0 = inlined_call_operand.vmem [shape: bf16[2,16,64], index: 0, kind: input, shape index: {}]   ;;  %s865_s1 = inlined_call_operand.vmem [shape: bf16[2,16,16], index: 1, kind: input, shape index: {}]   ;;  %s866_s5 = inlined_call_operand.vmem [shape: bf16[32,32], index: 5, kind: input, shape index: {}]   ;;  %s867_s6 = inlined_call_operand.vmem [shape: bf16[64,32], index: 6, kind: input, shape index: {}]   ;;  %s868_s2 = inlined_call_operand.vmem [shape: bf16[2,2,16], index: 2, kind: input, shape index: {}]   ;;  %s869_s3 = inlined_call_operand.vmem [shape: bf16[4,64], index: 3, kind: input, shape index: {}]   ;;  %s870_s7 = inlined_call_operand.vmem [shape: bf16[128,32], index: 7, kind: input, shape index: {}]   ;;  %s871_s8 = inlined_call_operand.vmem [shape: bf16[32,16], index: 8, kind: input, shape index: {}]   ;;  %s872_s9 = inlined_call_operand.vmem [shape: bf16[16,128], index: 9, kind: input, shape index: {}]   ;;  %s873_s11 = inlined_call_operand.vmem [shape: f32[2,128], index: 11, kind: output, shape index: {}]  }
   0x1   :  { %v646_v0 = vld [vmem:[%s862_s4 + $0x18] sm:$0xff]  ;;  %v645_v1 = vld [vmem:[%s862_s4 + $0x10] sm:$0xff]  ;;  %v644_v2 = vld [vmem:[%s862_s4 + $0x8] sm:$0xff] }
   0x2   :  { %96 = vmatpush.bf16.msra.mxu0 %v646_v0  ;;  %v643_v3 = vld [vmem:[%s862_s4] sm:$0xff]  ;;  %v648_v12 = vld [vmem:[%s866_s5 + $0x8] sm:$0xff]  ;;  %v654_v40 = vld [vmem:[%s867_s6 + $0x18] sm:$0xff] }
   0x3   :  { %v642_v4 = vld [vmem:[%s864_s0] sm:$0xff]  ;;  %160 = vmatpush.bf16.msra.mxu2 %v648_v12  ;;  %v650_v25 = vld [vmem:[%s864_s0 + $0x8] sm:$0xff]  ;;  %v653_v41 = vld [vmem:[%s867_s6 + $0x10] sm:$0xff] }
   0x4   :  { %v669_v6 = vld [vmem:[%s863_s10] ss:$0 sm:$0xff]  ;;  %v670_v15 = vld [vmem:[%s863_s10 + $0x1] ss:$0 sm:$0xff]  ;;  %v671_v27 = vld [vmem:[%s863_s10 + $0x2] ss:$0 sm:$0xff] }
   0x5   :  { %v641_v11 = vld [vmem:[%s865_s1] sm:$0xff]  ;;  %v649_v39 = vld [vmem:[%s865_s1 + $0x8] sm:$0xff]  ;;  %s678_s1 = smov 64  }
   0x6   :  { %97 = vmatpush.bf16.msra.mxu0 %v645_v1  ;;  %v647_v13 = vld [vmem:[%s866_s5] sm:$0xff]  ;;  %v652_v42 = vld [vmem:[%s867_s6 + $0x8] sm:$0xff] }
   0x7   :  { %161 = vmatpush.bf16.msra.mxu2 %v647_v13  ;;  %v651_v43 = vld [vmem:[%s867_s6] sm:$0xff] }
   0x8   :  { %v186_v44 = vld [vmem:[%s868_s2] sm:$0x1]  ;;  %v672_v58 = vld [vmem:[%s863_s10 + $0x3] ss:$0 sm:$0xff] }
   0x9   :  { %v311_v52 = vld [vmem:[%s869_s3] sm:$0x3] }
   0xa   :  { %98 = vmatpush.bf16.msra.mxu0 %v644_v2 }
   0xe   :  { %99 = vmatpush.bf16.msra.mxu0 %v643_v3 }
  0x11   :  { %543 = vmatmul.msk.bf16.vlgmr.msra.gmra.mxu0 %vm88_vm0, %v642_v4 }
  0x8e   :  { %v101_v5 = vpop.f32.mrf.mxu0 }
  0x8f   :  { %v102_v8 = vadd.f32 %v669_v6, %v101_v5  ;;  %v576_v5 = vld [vmem:[%s868_s2 + $0x1] sm:$0x1] }
  0x96   :  { %v103_v7 = vpop.f32.mrf.mxu0 }
  0x97   :  { %v104_v9 = vadd.f32 %v669_v6, %v103_v7  ;;  %v662_v7 = vld [vmem:[%s870_s7 + $0x38] sm:$0xff] }
  0x98   :  { %443 = vmatpush.bf16.msrb.mxu0 %v662_v7 }
  0x99   :  { %v106_v10 = vpack.c.bf16 %v104_v9, %v102_v8  ;;  %v661_v8 = vld [vmem:[%s870_s7 + $0x30] sm:$0xff]  ;;  %v660_v9 = vld [vmem:[%s870_s7 + $0x28] sm:$0xff] }
  0x9b   :  { %124 = vmatpush.bf16.msra.mxu1 %v106_v10  ;;  %v659_v10 = vld [vmem:[%s870_s7 + $0x20] sm:$0xff] }
  0x9c   :  { %444 = vmatpush.bf16.msrb.mxu0 %v661_v8 }
  0x9e   :  { %548 = vmatmul.msk.bf16.vlgmr.msra.gmra.mxu1 %vm113_vm1, %v641_v11 }
  0xa0   :  { %445 = vmatpush.bf16.msrb.mxu0 %v660_v9 }
  0xa4   :  { %446 = vmatpush.bf16.msrb.mxu0 %v659_v10 }
 0x11b   :  { %v126_v14 = vpop.f32.mrf.mxu1 }
 0x11c   :  { %v127_v16 = vadd.f32 %v670_v15, %v126_v14 }
 0x11e   :  { %v131_v19 = vmax.f32 %v127_v16, 0.0  ;;  %v655_v16 = vld [vmem:[%s870_s7] sm:$0xff] }
 0x123   :  { %v128_v17 = vpop.f32.mrf.mxu1 }
 0x124   :  { %v129_v18 = vadd.f32 %v670_v15, %v128_v17 }
 0x126   :  { %v132_v20 = vmax.f32 %v129_v18, 0.0 }
 0x128   :  { %v133_v21 = vpack.c.bf16 %v132_v20, %v131_v19 }
 0x12a   :  { %557 = vmatmul.msk.bf16.vlgmr.msra.gmra.mxu2 %vm150_vm2, %v133_v21 }
 0x1ad   :  { %v163_v22 = vpop.f32.mrf.mxu2 }
 0x1b5   :  { %v165_v23 = vpop.f32.mrf.mxu2 }
 0x1b6   :  { %v168_v24 = vpack.c.bf16 %v165_v23, %v163_v22 }
 0x1b8   :  { %177 = vmatpush.bf16.msra.mxu3 %v168_v24  ;;  %v664_v24 = vld [vmem:[%s871_s8 + $0x8] sm:$0xff] }
 0x1bb   :  { %558 = vmatmul.msk.bf16.vlgmr.msra.gmra.mxu3 %vm113_vm1, %v641_v11  ;;  %v658_v11 = vld [vmem:[%s870_s7 + $0x18] sm:$0xff] }
 0x1bc   :  { %222 = vmatpush.bf16.msrb.mxu3 %v646_v0  ;;  %447 = vmatpush.bf16.msrb.mxu0 %v658_v11 }
 0x1c0   :  { %223 = vmatpush.bf16.msrb.mxu3 %v645_v1 }
 0x1c4   :  { %224 = vmatpush.bf16.msrb.mxu3 %v644_v2 }
 0x1c8   :  { %225 = vmatpush.bf16.msrb.mxu3 %v643_v3 }
 0x1cb   :  { %568 = vmatmul.msk.bf16.vlgmr.msrb.gmra.mxu3 %vm88_vm0, %v650_v25  ;;  %v663_v25 = vld [vmem:[%s871_s8] sm:$0xff] }
 0x23e   :  { %v179_v26 = vpop.f32.mrf.mxu3 }
 0x23f   :  { %v180_v28 = vadd.f32 %v671_v27, %v179_v26  ;;  %v673_v26 = vld [vmem:[%s863_s10 + $0x4] ss:$0 sm:$0xff] }
 0x241   :  { %v184_v31 = vmax.f32 %v180_v28, 0.0 }
 0x246   :  { %v181_v29 = vpop.f32.mrf.mxu3 }
 0x247   :  { %v182_v30 = vadd.f32 %v671_v27, %v181_v29 }
 0x249   :  { %v185_v32 = vmax.f32 %v182_v30, 0.0 }
 0x24b   :  { %v187_v33 = vpack.c.bf16 %v185_v32, %v184_v31  ;;  %v665_v32 = vld [vmem:[%s872_s9] sm:$0xff] }
 0x24d   :  { %198 = vmatpush.bf16.msrb.mxu1 %v187_v33  ;;  %v674_v33 = vld [vmem:[%s863_s10 + $0x5] ss:$0 sm:$0xff] }
 0x24e   :  { %v227_v34 = vpop.f32.mrf.mxu3 }
 0x24f   :  { %v228_v36 = vadd.f32 %v669_v6, %v227_v34 }
 0x250   :  { %559 = vmatmul.msk.bf16.vlgmr.msrb.gmra.mxu1 %vm113_vm1, %v186_v44 }
 0x256   :  { %v229_v35 = vpop.f32.mrf.mxu3 }
 0x257   :  { %v230_v37 = vadd.f32 %v669_v6, %v229_v35 }
 0x259   :  { %v232_v38 = vpack.c.bf16 %v230_v37, %v228_v36 }
 0x25b   :  { %248 = vmatpush.bf16.msrb.mxu2 %v232_v38 }
 0x25e   :  { %573 = vmatmul.msk.bf16.vlgmr.msrb.gmra.mxu2 %vm113_vm1, %v649_v39 }
 0x25f   :  { %267 = vmatpush.bf16.msra.mxu2 %v648_v12  ;;  %v657_v12 = vld [vmem:[%s870_s7 + $0x10] sm:$0xff] }
 0x260   :  { %448 = vmatpush.bf16.msrb.mxu0 %v657_v12 }
 0x263   :  { %268 = vmatpush.bf16.msra.mxu2 %v647_v13  ;;  %v656_v13 = vld [vmem:[%s870_s7 + $0x8] sm:$0xff] }
 0x264   :  { %449 = vmatpush.bf16.msrb.mxu0 %v656_v13 }
 0x267   :  { %352 = vmatpush.bf16.msrb.mxu2 %v654_v40 }
 0x268   :  { %450 = vmatpush.bf16.msrb.mxu0 %v655_v16 }
 0x26b   :  { %353 = vmatpush.bf16.msrb.mxu2 %v653_v41 }
 0x26f   :  { %354 = vmatpush.bf16.msrb.mxu2 %v652_v42 }
 0x273   :  { %355 = vmatpush.bf16.msrb.mxu2 %v651_v43 }
 0x2cd   :  { %v200_v53 = vpop.f32.mrf.mxu1 }
 0x2d5   :  { %v202_v54 = vpop.f32.mrf.mxu1 }
 0x2e1   :  { %v250_v45 = vpop.f32.mrf.mxu2 }
 0x2e2   :  { %v251_v46 = vadd.f32 %v670_v15, %v250_v45 }
 0x2e4   :  { %v255_v49 = vmax.f32 %v251_v46, 0.0 }
 0x2e9   :  { %v252_v47 = vpop.f32.mrf.mxu2 }
 0x2ea   :  { %v253_v48 = vadd.f32 %v670_v15, %v252_v47 }
 0x2ec   :  { %v256_v50 = vmax.f32 %v253_v48, 0.0 }
 0x2ee   :  { %v257_v51 = vpack.c.bf16 %v256_v50, %v255_v49 }
 0x2f0   :  { %574 = vmatmul.msk.bf16.vlgmr.msra.gmra.mxu2 %vm150_vm2, %v257_v51 }
 0x300   :  { %594 = vmatmul.msk.bf16.vlgmr.msrb.gmra.mxu2 %vm88_vm0, %v311_v52 }
 0x373   :  { %v270_v55 = vpop.f32.mrf.mxu2 }
 0x37b   :  { %v272_v56 = vpop.f32.mrf.mxu2 }
 0x37c   :  { %v275_v57 = vpack.c.bf16 %v272_v56, %v270_v55 }
 0x37e   :  { %283 = vmatpush.bf16.msra.mxu1 %v275_v57 }
 0x381   :  { %575 = vmatmul.msk.bf16.vlgmr.msra.gmra.mxu1 %vm113_vm1, %v649_v39  ;;  %v675_v39 = vld [vmem:[%s863_s10 + $0x6] ss:$0 sm:$0xff] }
 0x382   :  { %484 = vmatpush.bf16.msrb.mxu1 %v664_v24 }
 0x383   :  { %v357_v59 = vpop.f32.mrf.mxu2 }
 0x384   :  { %v358_v60 = vadd.f32 %v672_v58, %v357_v59 }
 0x386   :  { %362 = vrot.lane.b32.xlu0 %v358_v60, %s676_s13  ;;  %v369_v6 = vrot.slane %v358_v60, 2  ;;  %485 = vmatpush.bf16.msrb.mxu1 %v663_v25 }
 0x388   :  { %370 = vrot.lane.b32.xlu1 %v369_v6, %s677_s15 }
 0x38b   :  { %v359_v61 = vpop.f32.mrf.mxu2 }
 0x3f8   :  { %v363_v17 = vpop.permute.xlu0 %362 }
 0x3f9   :  { %v373_v18 = vsel %vm150_vm2, %v200_v53, %v363_v17 }
 0x3fa   :  { %v371_v21 = vpop.permute.xlu1 %370 }
 0x3fe   :  { %v285_v62 = vpop.f32.mrf.mxu1 }
 0x3ff   :  { %v286_v63 = vadd.f32 %v671_v27, %v285_v62 }
 0x401   :  { %v290_v2 = vmax.f32 %v286_v63, 0.0 }
 0x406   :  { %v287_v0 = vpop.f32.mrf.mxu1 }
 0x407   :  { %v288_v1 = vadd.f32 %v671_v27, %v287_v0 }
 0x409   :  { %v291_v3 = vmax.f32 %v288_v1, 0.0 }
 0x40b   :  { %v294_v4 = vpack.c.bf16 %v291_v3, %v290_v2 }
 0x40d   :  { %305 = vmatpush.bf16.msra.mxu3 %v294_v4 }
 0x410   :  { %577 = vmatmul.msk.bf16.vlgmr.msra.gmra.mxu3 %vm113_vm1, %v576_v5 }
 0x411   :  { %512 = vmatpush.bf16.msrb.mxu3 %v665_v32 }
 0x493   :  { %v307_v14 = vpop.f32.mrf.mxu3 }
 0x494   :  { %366 = vrot.lane.b32.xlu0 %v307_v14, %s678_s1 }
 0x49b   :  { %v309_v15 = vpop.f32.mrf.mxu3 }
 0x506   :  { %v367_v19 = vpop.permute.xlu0 %366 }
 0x507   :  { %v374_v20 = vsel %vm88_vm0, %v373_v18, %v367_v19 }
 0x508   :  { %v376_v22 = vsel %vm375_vm3, %v374_v20, %v371_v21 }
 0x509   :  { %v377_v23 = vpack.c.bf16 %v376_v22, %v376_v22 }
 0x50b   :  { %451 = vmatmul.bf16.vlgmr.msrb.gmra.mxu0 %v377_v23 }
 0x588   :  { %v452_v27 = vpop.f32.mrf.mxu0 }
 0x589   :  { %v453_v28 = vadd.f32 %v673_v26, %v452_v27 }
 0x58b   :  { %v456_v29 = vmax.f32 %v453_v28, 0.0 }
 0x58d   :  { %v457_v30 = vpack.c.bf16 %v456_v29, %v456_v29 }
 0x58f   :  { %635 = vmatmul.msk.bf16.vlgmr.msrb.gmra.mxu1 %vm150_vm2, %v457_v30 }
 0x590   :  { %v454_v31 = vpop.f32.mrf.mxu0 }
 0x60c   :  { %v487_v34 = vpop.f32.mrf.mxu1 }
 0x60d   :  { %v488_v35 = vadd.f32 %v674_v33, %v487_v34 }
 0x60f   :  { %v491_v36 = vmax.f32 %v488_v35, 0.0 }
 0x611   :  { %v492_v37 = vpack.c.bf16 %v491_v36, %v491_v36 }
 0x613   :  { %640 = vmatmul.msk.bf16.vlgmr.msrb.gmra.mxu3 %vm113_vm1, %v492_v37 }
 0x614   :  { %v489_v38 = vpop.f32.mrf.mxu1 }
 0x696   :  { %v514_v40 = vpop.f32.mrf.mxu3 }
 0x697   :  { %v515_v41 = vadd.f32 %v675_v39, %v514_v40 }
 0x699   :  { %518 = vst [vmem:[%s873_s11] sm:$0x3] %v515_v41 }
 0x69e   :  { %v516_v42 = vpop.f32.mrf.mxu3 }

</bundles_post_ra>
